<compile_context>
chip_gen: v7x
topology: tpu7x:2x2x1
jax: 0.10.0
libtpu: 0.0.40
codegen_flags: <defaults>
</compile_context>

<pallas_src>
import functools

import jax
import jax.numpy as jnp
from jax.experimental import pallas as pl
from jax.experimental.pallas import tpu as pltpu


def _round_up(x, m):
    return (x + m - 1) // m * m


def _focal_loss_kernel(x_ref, t_ref, o_ref, *, gamma, eps, n_rows, row_tile):
    i = pl.program_id(0)

    x = x_ref[...].astype(jnp.float32)                      # (T, C)
    t = t_ref[...]                                          # (T, 1) int32

    # Row-wise max for a numerically stable softmax.
    m = jnp.max(x, axis=-1, keepdims=True)                  # (T, 1)  XLU

    # Target-class logit via one-hot select + row reduce on the *input* tile
    # (keeps this reduction off the f32 exp tile's dependency chain).
    cls = jax.lax.broadcasted_iota(jnp.int32, x.shape, 1)   # (T, C)
    x_t = jnp.sum(jnp.where(cls == t, x, 0.0), axis=-1, keepdims=True)

    # Softmax denominator: the only reduction that touches the exp tile.
    e = jnp.exp(x - m)                                      # (T, C)  EUP
    s = jnp.sum(e, axis=-1, keepdims=True)                  # (T, 1)  XLU

    # Only the target column of the reference loss survives the one-hot mask,
    # so clip / log / gamma-weight run on a (T, 1) column, not the full tile.
    p_t = jnp.clip(jnp.exp(x_t - m) / s, eps, 1.0 - eps)    # (T, 1)
    loss = -jnp.log(p_t)                                    # per-row EUP only

    g = float(gamma)
    if g != 0.0:
        q = 1.0 - p_t
        if g.is_integer() and 0.0 < g <= 8.0:
            w = q
            for _ in range(int(g) - 1):                     # VPU multiplies
                w = w * q
            loss = loss * w
        else:
            loss = loss * q ** g                            # pow only if needed

    # Zero rows past N (last partial block) with a SELECT so NaN/Inf garbage
    # from the unpadded tail cannot leak into the partial sum.
    row = jax.lax.broadcasted_iota(jnp.int32, (loss.shape[0], 1), 0) + i * row_tile
    loss = jnp.where(row < n_rows, loss, 0.0)

    # Per-block partial sum, broadcast over the lane-dense (1, 8, 128) tile.
    o_ref[...] = jnp.zeros(o_ref.shape, jnp.float32) + jnp.sum(loss)


def focal_loss(inputs, targets, *, gamma=0.0, eps=1e-7, row_tile=None):
    """inputs: (N, C) float logits (f32 or bf16); targets: (N,) int class ids."""
    N, C = inputs.shape
    itemsize = jnp.dtype(inputs.dtype).itemsize
    # Sublane granularity of the second-to-last block dim (f32: 8, bf16: 16).
    row_align = {4: 8, 2: 16, 1: 32}.get(itemsize, 8)

    if row_tile is None:
        # ~2 MiB of logits per grid step: tile-size returns are flat past
        # ~512 rows, and the 2x-buffered input plus full-tile f32 temporaries
        # stays far under every generation's VMEM (including v7x's 64 MiB).
        target_bytes = 2 * 1024 * 1024
        row_tile = max(1, target_bytes // (C * itemsize))
    # Cap the tile so the grid has >= ~4 blocks: keeps the BlockSpec
    # double-buffering overlapped and gives both v7x TensorCores work on the
    # "parallel" row axis (zero cost on single-TC v5e/v6e).
    row_tile = min(int(row_tile), 8192, _round_up(pl.cdiv(N, 4), row_align))
    row_tile = max(row_align, _round_up(row_tile, row_align))

    num_blocks = pl.cdiv(N, row_tile)
    targets2d = targets.astype(jnp.int32).reshape(N, 1)

    kernel = functools.partial(
        _focal_loss_kernel, gamma=gamma, eps=eps, n_rows=N, row_tile=row_tile
    )

    partials = pl.pallas_call(
        kernel,
        out_shape=jax.ShapeDtypeStruct((num_blocks, 8, 128), jnp.float32),
        grid_spec=pltpu.PrefetchScalarGridSpec(
            num_scalar_prefetch=0,
            grid=(num_blocks,),
            in_specs=[
                pl.BlockSpec((row_tile, C), lambda i: (i, 0)),
                pl.BlockSpec((row_tile, 1), lambda i: (i, 0)),
            ],
            out_specs=pl.BlockSpec((1, 8, 128), lambda i: (i, 0, 0)),
        ),
        compiler_params=pltpu.CompilerParams(
            dimension_semantics=("parallel",),
            # Safe on every generation (v7x physical VMEM is 64 MiB); with a
            # ~2 MiB tile this leaves ample headroom for the f32 temporaries.
            # (v5e's default scoped limit is only 16 MiB, so keep it explicit.)
            vmem_limit_bytes=40 * 1024 * 1024,
        ),
    )(inputs, targets2d)

    total = jnp.sum(partials[:, 0, 0])
    return total / float(N * C)


def focal_loss_ref(inputs, targets, *, gamma=0.0, eps=1e-7):
    C = inputs.shape[-1]
    y = jax.nn.one_hot(targets, C, dtype=jnp.float32)
    p = jax.nn.softmax(inputs.astype(jnp.float32), axis=-1)
    p = jnp.clip(p, eps, 1.0 - eps)
    loss = -y * jnp.log(p) * (1.0 - p) ** gamma
    return jnp.mean(loss)


if __name__ == "__main__":
    key = jax.random.PRNGKey(0)
    k1, k2, k3, k4, k5, k6 = jax.random.split(key, 6)

    # Case 1: typical use (gamma=2 exercises the integer-gamma VPU path);
    # multi-block grid, no partial block.
    N, C = 16, 32
    x = jax.random.normal(k1, (N, C), dtype=jnp.float32)
    t = jax.random.randint(k2, (N,), 0, C, dtype=jnp.int32)
    out = jax.block_until_ready(focal_loss(x, t, gamma=2.0, eps=1e-7))
    ref = focal_loss_ref(x, t, gamma=2.0, eps=1e-7)
    assert jnp.allclose(out, ref, rtol=1e-5, atol=1e-6), (out, ref)

    # Case 2: ragged N (unpadded partial last block + in-kernel mask) and
    # non-integer gamma (pow path).
    N2, C2 = 13, 32
    x2 = jax.random.normal(k3, (N2, C2), dtype=jnp.float32)
    t2 = jax.random.randint(k4, (N2,), 0, C2, dtype=jnp.int32)
    out2 = jax.block_until_ready(focal_loss(x2, t2, gamma=1.5, eps=1e-7))
    ref2 = focal_loss_ref(x2, t2, gamma=1.5, eps=1e-7)
    assert jnp.allclose(out2, ref2, rtol=1e-5, atol=1e-6), (out2, ref2)

    # Case 3: bf16 logits (half the HBM bytes, f32 compute in-kernel), ragged
    # N with a partial bf16 block and a 4-block grid.
    N3, C3 = 50, 32
    x3 = jax.random.normal(k5, (N3, C3), dtype=jnp.float32).astype(jnp.bfloat16)
    t3 = jax.random.randint(k6, (N3,), 0, C3, dtype=jnp.int32)
    out3 = jax.block_until_ready(focal_loss(x3, t3, gamma=2.0, eps=1e-7))
    ref3 = focal_loss_ref(x3, t3, gamma=2.0, eps=1e-7)
    assert jnp.allclose(out3, ref3, rtol=1e-5, atol=1e-6), (out3, ref3)

    print("KERNEL_OK")
</pallas_src>

<mosaic_0001>
module attributes {stable_mosaic.version = 11 : i64} {
  func.func @_focal_loss_kernel(%arg0: i32, %arg1: memref<8x32xf32, #tpu.memory_space<vmem>>, %arg2: memref<8x1xi32, #tpu.memory_space<vmem>>, %arg3: memref<1x8x128xf32, #tpu.memory_space<vmem>>) attributes {dimension_semantics = [#tpu.dimension_semantics<parallel>], iteration_bounds = array<i64: 2>, scalar_prefetch = 0 : i64, scratch_operands = 0 : i64, tpu.core_type = #tpu.core_type<tc>, window_params = [{transform_indices = @transform_0, window_bounds = array<i64: 8, 32>}, {transform_indices = @transform_1, window_bounds = array<i64: 8, 1>}, {transform_indices = @transform_2, window_bounds = array<i64: 1, 8, 128>}]} {
    %c0 = arith.constant 0 : index
    %c0_0 = arith.constant 0 : index
    %0 = vector.load %arg1[%c0, %c0_0] : memref<8x32xf32, #tpu.memory_space<vmem>>, vector<8x32xf32>
    %c0_1 = arith.constant 0 : index
    %c0_2 = arith.constant 0 : index
    %1 = vector.load %arg2[%c0_1, %c0_2] : memref<8x1xi32, #tpu.memory_space<vmem>>, vector<8x1xi32>
    %cst = arith.constant dense<0xFF800000> : vector<8xf32>
    %2 = vector.multi_reduction <maximumf>, %0, %cst [1] : vector<8x32xf32> to vector<8xf32>
    %3 = vector.shape_cast %2 : vector<8xf32> to vector<8x1xf32>
    %4 = tpu.iota {dimensions = array<i32: 1>} : vector<8x32xi32>
    %5 = vector.broadcast %1 : vector<8x1xi32> to vector<8x32xi32>
    %6 = arith.cmpi eq, %4, %5 : vector<8x32xi32>
    %cst_3 = arith.constant 0.000000e+00 : f32
    %7 = vector.broadcast %cst_3 : f32 to vector<8x32xf32>
    %8 = arith.select %6, %0, %7 : vector<8x32xi1>, vector<8x32xf32>
    %cst_4 = arith.constant dense<0.000000e+00> : vector<8xf32>
    %9 = vector.multi_reduction <add>, %8, %cst_4 [1] : vector<8x32xf32> to vector<8xf32>
    %10 = vector.shape_cast %9 : vector<8xf32> to vector<8x1xf32>
    %11 = vector.broadcast %3 : vector<8x1xf32> to vector<8x32xf32>
    %12 = arith.subf %0, %11 : vector<8x32xf32>
    %13 = math.exp %12 : vector<8x32xf32>
    %cst_5 = arith.constant dense<0.000000e+00> : vector<8xf32>
    %14 = vector.multi_reduction <add>, %13, %cst_5 [1] : vector<8x32xf32> to vector<8xf32>
    %15 = vector.shape_cast %14 : vector<8xf32> to vector<8x1xf32>
    %16 = arith.subf %10, %3 : vector<8x1xf32>
    %17 = math.exp %16 : vector<8x1xf32>
    %18 = arith.divf %17, %15 : vector<8x1xf32>
    %cst_6 = arith.constant 1.000000e-07 : f32
    %cst_7 = arith.constant 0.99999988 : f32
    %19 = vector.broadcast %cst_6 : f32 to vector<8x1xf32>
    %20 = arith.maximumf %19, %18 : vector<8x1xf32>
    %21 = vector.broadcast %cst_7 : f32 to vector<8x1xf32>
    %22 = arith.minimumf %21, %20 : vector<8x1xf32>
    %23 = math.log %22 : vector<8x1xf32>
    %cst_8 = arith.constant 0.000000e+00 : f32
    %24 = vector.broadcast %cst_8 : f32 to vector<8x1xf32>
    %25 = arith.subf %24, %23 : vector<8x1xf32>
    %cst_9 = arith.constant 1.000000e+00 : f32
    %26 = vector.broadcast %cst_9 : f32 to vector<8x1xf32>
    %27 = arith.subf %26, %22 : vector<8x1xf32>
    %28 = arith.mulf %27, %27 : vector<8x1xf32>
    %29 = arith.mulf %25, %28 : vector<8x1xf32>
    %30 = tpu.iota {dimensions = array<i32: 0>} : vector<8x1xi32>
    %c8_i32 = arith.constant 8 : i32
    %31 = arith.muli %arg0, %c8_i32 : i32
    %32 = vector.broadcast %31 : i32 to vector<8x1xi32>
    %33 = arith.addi %30, %32 : vector<8x1xi32>
    %c16_i32 = arith.constant 16 : i32
    %34 = vector.broadcast %c16_i32 : i32 to vector<8x1xi32>
    %35 = arith.cmpi slt, %33, %34 : vector<8x1xi32>
    %cst_10 = arith.constant 0.000000e+00 : f32
    %36 = vector.broadcast %cst_10 : f32 to vector<8x1xf32>
    %37 = arith.select %35, %29, %36 : vector<8x1xi1>, vector<8x1xf32>
    %cst_11 = arith.constant 0.000000e+00 : f32
    %38 = vector.broadcast %cst_11 : f32 to vector<1x8x128xf32>
    %39 = vector.shape_cast %37 : vector<8x1xf32> to vector<1x8x1xf32>
    %cst_12 = arith.constant dense<0.000000e+00> : vector<1xf32>
    %40 = vector.multi_reduction <add>, %39, %cst_12 [1, 2] : vector<1x8x1xf32> to vector<1xf32>
    %41 = vector.shape_cast %40 : vector<1xf32> to vector<1x1x1xf32>
    %42 = vector.extract %41[0, 0, 0] : f32 from vector<1x1x1xf32>
    %43 = vector.broadcast %42 : f32 to vector<1x8x128xf32>
    %44 = arith.addf %38, %43 : vector<1x8x128xf32>
    %c0_13 = arith.constant 0 : index
    %c0_14 = arith.constant 0 : index
    %c0_15 = arith.constant 0 : index
    %45 = vector.load %arg3[%c0_13, %c0_14, %c0_15] : memref<1x8x128xf32, #tpu.memory_space<vmem>>, vector<1x8x128xf32>
    tpu.vector_store %arg3[%c0_13, %c0_14, %c0_15], %44 {strides = array<i32>} : memref<1x8x128xf32, #tpu.memory_space<vmem>>, vector<1x8x128xf32>,
    return
  }
  func.func @transform_0(%arg0: i32) -> (i32, i32) {
    %c0_i32 = arith.constant 0 : i32
    %c0_i32_0 = arith.constant 0 : i32
    return %arg0, %c0_i32 : i32, i32
  }
  func.func @transform_1(%arg0: i32) -> (i32, i32) {
    %c0_i32 = arith.constant 0 : i32
    %c0_i32_0 = arith.constant 0 : i32
    return %arg0, %c0_i32 : i32, i32
  }
  func.func @transform_2(%arg0: i32) -> (i32, i32, i32) {
    %c0_i32 = arith.constant 0 : i32
    %c0_i32_0 = arith.constant 0 : i32
    %c0_i32_1 = arith.constant 0 : i32
    return %arg0, %c0_i32, %c0_i32_0 : i32, i32, i32
  }
}

</mosaic_0001>

<bundles_post_ra>
// kernel: tpu_custom_call.1
= control target key start
LH: loop header
LB: loop body
LE: loop exit
PB: predicated region body
PF: predicated region fallthrough
CT: control target
= control target key end

     0   :  { %7 = vsyncpa [#allocation3], 0  ;;  %s548_s0 = inlined_call_operand.vmem [shape: f32[16,32], index: 0, kind: input, shape index: {}]   ;;  %s549_s1 = inlined_call_operand.vmem [shape: s32[16,1], index: 1, kind: input, shape index: {}]   ;;  %s550_s2 = inlined_call_operand.hbm [shape: f32[2,8,128], index: 2, kind: output, shape index: {}]  }
   0x1   :  { %9 = vsyncpa [#allocation3 + $0x1], 0  ;;  %s441_s9 = smov 0   ;;  %s443_s10 = smov 0  }
   0x2   :  { %s445_s11 = smov 0   ;;  %s447_s12 = smov 0  }
   0x3 LB: > { %s462_s13 = sadd.s32 4294967295, %s422_s12   ;;  %s297_s14 = sadd.s32 4294967294, %s422_s12   ;;  %s422_s12 = sphi %s447_s12, %s556_s12   ;;  %s418_s11 = sphi %s445_s11, %s555_s11   ;;  %s414_s10 = sphi %s443_s10, %s554_s10   ;;  %s410_s9 = sphi %s441_s9, %s553_s9  }
   0x4   : > { %s466_s15 = sadd.s32 1, %s422_s12   ;;  %s74_s16 = sadd.s32 1, %s418_s11 }
   0x5   : > { %s71_s17 = ssub.s32 %s422_s12, %s466_s15  ;;  %p84_p0 = scmp.ne.s32.totalorder %s418_s11, %s414_s10 }
   0x6   : > { %p72_p1 = scmp.eq.s32.totalorder %s71_s17, 0  ;;  %p85_p2 = scmp.eq.s32.totalorder %s462_s13, 1 }
   0x7   : > { %p90_p3 = scmp.ne.s32.totalorder %s414_s10, %s410_s9  ;;  %p91_p4 = scmp.eq.s32.totalorder %s297_s14, 1 }
   0x8   : > { %s477_s18 = scalar_select %p72_p1, %s418_s11, %s74_s16  }
   0x9   : > { %p479_p5 = por %p85_p2, %p84_p0  ;;  %p483_p6 = por %p91_p4, %p90_p3 }
   0xa   : > { %p300_p7 = scmp.ge.s32.totalorder %s422_s12, 1  ;;  %p123_p8 = scmp.lt.s32.totalorder %s422_s12, 3 }
   0xc   : > { %p124_p9 = pnand %p300_p7, %p123_p8 }
   0xd   : > { %p148_p10 = scmp.lt.s32.totalorder (!%p124_p9), %s462_s13, 1  ;;  %v424_v0 = vmov (!%p124_p9), 0   ;;  %vm158_vm0 = vcmask (!%p124_p9), 261120   ;;  %v162_v6 = vlaneseq (!%p124_p9)  ;;  %s304_s29 = sshll.u32 (!%p124_p9), %s462_s13, 3  ;;  %vm198_vm3 = vcmask (!%p124_p9), 7168  }
   0xe   : > { %127 = sbr.rel (%p124_p9) target bundleno = 582 (0x246), region = 28  ;;  %351 = vset.pattern.permute.xlu0 (!%p124_p9), %v424_v0  ;;  %v194_v24 = vstv (!%p124_p9), %s304_s29  ;;  %s145_s30 = sand.u32 (!%p124_p9), 1, %s414_s10  }
   0xf   : > { %v163_v8 = vand.u32 (!%p124_p9), 127, %v162_v6  ;;  %v192_v23 = vshrl.u32 (!%p124_p9), %v162_v6, 7  ;;  %s301_s3 = sshll.u32 (!%p124_p9), %s145_s30, 3  ;;  %s306_s6 = sshll.u32 (!%p124_p9), %s462_s13, 7 }
  0x10   : > { %s147_s4 = scalar_lea.vmem (!%p124_p9), [#allocation2], %s301_s3  ;;  %s508_s16 = scalar_lea.hbm (!%p124_p9), %s550_s2, %s306_s6 }
  0x11   : > { %v195_v27 = vadd.s32 (!%p124_p9), %v194_v24, %v192_v23  ;;  %s226_s5 = sshll.u32 (!%p124_p9), %s147_s4, 4  ;;  %s213_s17 = scalar_lea.sflag (!%p124_p9), [#allocation3], %s145_s30  ;;  %s503_s5 = int_to_ptr.vmem [resolvable:$true] %s226_s5 }
  0x13   : > { %vm196_vm2 = vcmp.lt.s32.totalorder (!%p124_p9), %v195_v27, 16 }
  0x15   : > { %s149_s21 = scalar_select %p148_p10, %s462_s13, 1 }
  0x16   : > { %s425_s13 = smov [#allocation2]  }
  0x17   : > { %s302_s22 = sshll.u32 %s149_s21, 3  ;;  %s360_s21 = scalar_lea.vmem %s503_s5, 128 }
  0x18   : > { %s151_s25 = scalar_lea.vmem %s548_s0, %s302_s22  ;;  %s155_s28 = scalar_lea.vmem %s549_s1, %s302_s22 }
  0x19   : > { %v156_v1 = vld [vmem:[%s151_s25] sm:$0xff]  ;;  %p361_p11 = scmp.ne.s32.totalorder %s503_s5, %s360_s21  ;;  %s364_s22 = sshll.u32 %s425_s13, 4  ;;  %s365_s22 = int_to_ptr.vmem [resolvable:$false] %s364_s22 }
  0x1a   : > { %v159_v2 = vsel %vm158_vm0, %v156_v1, -inf  ;;  %v157_v3 = vld [vmem:[%s155_s28] sm:$0xff]  ;;  %s366_s23 = scalar_lea.vmem %s365_s22, 256  ;;  %p367_p0 = scmp.lt.s32.totalorder %s503_s5, %s365_s22 }
  0x1b   : > { %160 = vmax.xlane.f32.xlu0 %v159_v2  ;;  %p362_p12 = pnand %p361_p11, %p479_p5  ;;  %p368_p1 = scmp.lt.s32.totalorder %s366_s23, %s360_s21 }
  0x1d   : > { %p363_p13 = pneg %p362_p12  ;;  %p369_p2 = por %p368_p1, %p367_p0 }
  0x1f   : > { %p370_p3 = pnand %p369_p2, %p363_p13 }
  0x31   : > { %165 = vperm.xlu0 %351, %v157_v3  }
  0xa8   : > { %v161_v4 = vpop.xlane.xlu0 %160 }
  0xa9   : > { %v172_v5 = vsub.f32 %v156_v1, %v161_v4 }
  0xab   : > { %v173_v7 = vmul.f32 1.442695, %v172_v5 }
  0xad   : > { %352 = vpow2.f32 %v173_v7 }
  0xb0   : > { %v166_v9 = vpop.permute.xlu0 %165 }
  0xb1   : > { %vm167_vm1 = vcmp.eq.s32.totalorder %v163_v8, %v166_v9 }
  0xb2   : > { %v168_v10 = vsel %vm167_vm1, %v156_v1, 0.0 }
  0xb3   : > { %v169_v11 = vsel %vm158_vm0, %v168_v10, 0.0 }
  0xb4   : > { %170 = vadd.xlane.f32.xlu1 %v169_v11 }
  0xb7   : > { %v353_v12 = vpop.eup %352 }
  0xb8   : > { %v175_v13 = vsel %vm158_vm0, %v353_v12, 0.0 }
  0xb9   : > { %176 = vadd.xlane.f32.xlu1 %v175_v13 }
 0x141   : > { %v171_v14 = vpop.xlane.xlu1 %170 }
 0x142   : > { %v178_v15 = vsub.f32 %v171_v14, %v161_v4 }
 0x144   : > { %v179_v16 = vmul.f32 1.442695, %v178_v15 }
 0x146   : > { %354 = vpow2.f32 %v179_v16  ;;  %v177_v17 = vpop.xlane.xlu1 %176 }
 0x147   : > { %356 = vrcp.f32 %v177_v17 }
 0x150   : > { %v355_v18 = vpop.eup %354 }
 0x151   : > { %v357_v19 = vpop.eup %356 }
 0x152   : > { %v182_v20 = vmul.f32 %v357_v19, %v355_v18 }
 0x154   : > { %v183_v21 = vmax.f32 %v182_v20, 1e-07 }
 0x156   : > { %v184_v22 = vmin.f32 %v183_v21, 0.9999999 }
 0x158   : > { %358 = vlog2.f32 %v184_v22  ;;  %v188_v25 = vsub.f32 1.0, %v184_v22 }
 0x15a   : > { %v189_v30 = vmul.f32 %v188_v25, %v188_v25 }
 0x162   : > { %v359_v26 = vpop.eup %358 }
 0x163   : > { %v186_v28 = vmul.f32 0.6931472, %v359_v26 }
 0x165   : > { %v187_v29 = vsub.f32 0.0, %v186_v28 }
 0x167   : > { %v190_v31 = vmul.f32 %v189_v30, %v187_v29 }
 0x169   : > { %v197_v32 = vsel %vm196_vm2, %v190_v31, 0.0 }
 0x16a   : > { %v199_v33 = vsel %vm198_vm3, %v197_v32, 0.0 }
 0x16b   : > { %200 = vadd.xlane.f32.xlu1 %v199_v33 }
 0x1f8   : > { %v201_v34 = vpop.xlane.xlu1 %200 }
 0x1f9   : > { %v202_v35 = vrot.slane %v201_v34, 4 }
 0x1fb   : > { %v203_v36 = vadd.f32 %v202_v35, %v201_v34 }
 0x1fd   : > { %v204_v37 = vrot.slane %v203_v36, 2 }
 0x1ff   : > { %v205_v38 = vadd.f32 %v204_v37, %v203_v36 }
 0x201   : > { %v206_v39 = vrot.slane %v205_v38, 1 }
 0x203   : > { %v207_v40 = vadd.f32 %v206_v39, %v205_v38 }
 0x205   : > { %309 = vpush %v207_v40 }
 0x236   : > { %s310_s7 = spop %309 }
 0x237   : > { %v209_v41 = vstv %s310_s7 }
 0x238   : > { %211 = vst [vmem:[%s147_s4] sm:$0xff] %v209_v41 }
 0x239   : > { %373 = shalt.err (!%p370_p3)
}
 0x23a   : > { %s374_s24 = scalar_lea.hbm %s508_s16, 128  ;;  %s378_s27 = scalar_lea.hbm %s550_s2, 256 }
 0x23b   : > { %p375_p4 = scmp.ne.s32.totalorder %s508_s16, %s374_s24  ;;  %p379_p9 = scmp.lt.u32.totalorder %s508_s16, %s550_s2 }
 0x23c   : > { %p380_p10 = scmp.lt.u32.totalorder %s378_s27, %s374_s24  ;;  %p382_p12 = scmp.lt.u32.totalorder %s374_s24, %s508_s16 }
 0x23d   : > { %p376_p7 = pnand %p375_p4, %p479_p5 }
 0x23e   : > { %p381_p11 = por %p380_p10, %p379_p9 }
 0x23f   : > { %p377_p8 = pneg %p376_p7 }
 0x240   : > { %p383_p13 = por %p382_p12, %p381_p11 }
 0x242   : > { %p384_p0 = pnand %p383_p13, %p377_p8 }
 0x244   : > { %387 = shalt.err (!%p384_p0)
}
 0x245   : > { %311 = dma.vmem_to_hbm [thread:$0]  (%p479_p5), %s503_s5, 128, %s508_s16, %s213_s17  }
 0x246 PF: > { %p317_p1 = scmp.ge.s32.totalorder %s422_s12, 2  ;;  %s238_s30 = sand.u32 1, %s410_s9  }
 0x247   : > { %s239_s3 = scalar_lea.sflag [#allocation3], %s238_s30 }
 0x248   : > { %p314_p2 = pnand %p317_p1, %p483_p6 }
 0x24a   : > { %405 = dma.done.wait (!%p314_p2), %s239_s3, 128  }
 0x24b   : > { %407 = vsyncadd (!%p314_p2), %s239_s3, 4294967168  ;;  %p12_p3 = scmp.ge.s32.totalorder %s466_s15, 4   ;;  %s553_s9 = smov %s414_s10 }
 0x24c   : > { %s554_s10 = smov %s418_s11  ;;  %s555_s11 = smov %s477_s18 }
 0x24d   : > { %s556_s12 = smov %s466_s15  ;;  %14 = sbr.rel (!%p12_p3) target bundleno = 3 (0x3), region = 66 }
 0x254   :  { %244 = vsyncpa [#allocation3], 1 }
 0x255   :  { %246 = vsyncpa [#allocation3 + $0x1], 1 }

</bundles_post_ra>
